<compile_context>
chip_gen: v5e
topology: v5e:2x2
jax: 0.10.0
libtpu: 0.0.40
codegen_flags: <defaults>
</compile_context>

<pallas_src>
import functools

import jax
import jax.numpy as jnp
from jax.experimental import pallas as pl
from jax.experimental.pallas import tpu as pltpu


_LANE = 128


# ---------------------------------------------------------------------------
# Hardware-aware budgets
# ---------------------------------------------------------------------------
def _tpu_vmem_capacity_bytes():
    try:
        return int(pltpu.get_tpu_info().vmem_capacity_bytes)
    except Exception:
        return 64 << 20  # conservative fallback (v7x per-TC VMEM)


def _budgets():
    vmem = _tpu_vmem_capacity_bytes()
    # Leave headroom below physical VMEM for weights, semaphores and the
    # compiler's internal scratch (esp. important on v7x's 64 MiB per TC).
    vmem_cap = max(32 << 20, vmem - (8 << 20))
    # Bigger blocks on 128-MiB parts (v5e/v6e), smaller on v7x.
    gen_target = (8 << 20) if vmem >= (96 << 20) else (4 << 20)
    # The fused kernel keeps ~7x the block live at peak (double-buffered in +
    # out blocks plus transient f32 cast temporaries), so bound the per-step
    # block (and the fused/two-pass threshold) accordingly.
    fused_budget = max(4 << 20, (vmem_cap - (6 << 20)) // 7)
    target_block = min(gen_target, fused_budget)
    return vmem_cap, target_block, fused_budget


def _vmem_limit(block_bytes, weight_bytes, vmem_cap, factor):
    need = factor * block_bytes + weight_bytes + (4 << 20)
    return int(min(vmem_cap, max(32 << 20, need)))


def _ceil_div(a, b):
    return -(-a // b)


def _round_up(a, b):
    return _ceil_div(a, b) * b


# ---------------------------------------------------------------------------
# Fused single-pass kernel: one (TB, C, L) slab per grid step.
# ---------------------------------------------------------------------------
def _se_fused_kernel(x_ref, w1t_ref, b1_ref, w2t_ref, b2_ref, o_ref):
    # Squeeze: mean over time.  The cast folds into the reduction; we do NOT
    # keep an f32 copy of the tile live across the excitation matmuls.
    s = jnp.mean(x_ref[...].astype(jnp.float32), axis=-1)            # (TB, C)

    # Excitation: 1x1 convs == batched matmuls across the TB batch items.
    h = jnp.dot(s, w1t_ref[...], preferred_element_type=jnp.float32) + b1_ref[...]
    h = jnp.maximum(h, 0.0)                                           # (TB, Cse)
    z = jnp.dot(h, w2t_ref[...], preferred_element_type=jnp.float32) + b2_ref[...]
    # sigmoid: exp and approx reciprocal both run on the (otherwise idle) EUP.
    g = pl.reciprocal(1.0 + jnp.exp(-z), approx=True)                 # (TB, C)

    # Scale: re-read the resident VMEM block and multiply in the I/O dtype
    # (native bf16 on v6e/v7x; the compiler upcasts where needed on v5e).
    o_ref[...] = g[:, :, None].astype(o_ref.dtype) * x_ref[...]


# ---------------------------------------------------------------------------
# Two-pass fallback for big (C, L) slabs: pass 1 computes lane-dense gates
# with an L-tiled reduction; pass 2 is a lane-dense elementwise scale.
# ---------------------------------------------------------------------------
def _se_gates_kernel(x_ref, w1t_ref, b1_ref, w2t_ref, b2_ref, g_ref, acc_ref,
                     *, inv_len):
    li = pl.program_id(1)

    @pl.when(li == 0)
    def _():
        acc_ref[...] = jnp.zeros_like(acc_ref)

    acc_ref[...] += jnp.sum(x_ref[...].astype(jnp.float32), axis=-1)   # (TB, C)

    @pl.when(li == pl.num_programs(1) - 1)
    def _():
        s = acc_ref[...] * inv_len                                     # (TB, C)
        h = jnp.dot(s, w1t_ref[...], preferred_element_type=jnp.float32) + b1_ref[...]
        h = jnp.maximum(h, 0.0)
        z = jnp.dot(h, w2t_ref[...], preferred_element_type=jnp.float32) + b2_ref[...]
        g = pl.reciprocal(1.0 + jnp.exp(-z), approx=True)              # (TB, C)
        g_ref[...] = g[:, None, :]                                     # (TB, 1, C)


def _se_scale_kernel(g_ref, x_ref, o_ref):
    g = g_ref[...][:, 0, :, None]                                      # (TB, C, 1) f32
    # Multiply in the I/O dtype (native bf16 VALU on v6e/v7x).
    o_ref[...] = g.astype(o_ref.dtype) * x_ref[...]


# ---------------------------------------------------------------------------
# Wrapper
# ---------------------------------------------------------------------------
def se_block(x, w1, b1, w2, b2, *, force_two_pass=False, max_l_tile=None):
    """x: (B, C, L); w1: (Cse, C); b1: (Cse,); w2: (Cout, Cse); b2: (Cout,)."""
    B, C, L = x.shape
    Cse = w1.shape[0]
    Cout = w2.shape[0]
    assert Cout == C, "SEBlock broadcast (s * x) requires out_channels == in_channels"

    itemsize = jnp.dtype(x.dtype).itemsize
    per_batch_bytes = C * L * itemsize
    vmem_cap, target_block, fused_budget = _budgets()

    # Weights are tiny; keep them f32 and pre-transposed for (TB, C) @ (C, Cse).
    w1t = jnp.asarray(w1).T.astype(jnp.float32)            # (C, Cse)
    w2t = jnp.asarray(w2).T.astype(jnp.float32)            # (Cse, C)
    b1r = jnp.asarray(b1).reshape(1, Cse).astype(jnp.float32)
    b2r = jnp.asarray(b2).reshape(1, Cout).astype(jnp.float32)
    weight_bytes = 4 * (2 * C * Cse + C + Cse)

    # ------------------------------------------------------------------ fused
    if per_batch_bytes <= fused_budget and not force_two_pass:
        tb_cap = max(1, target_block // max(1, per_batch_bytes))
        TB = max(1, min(B, tb_cap))
        if B >= 2:
            # Keep >= 2 grid steps so the parallel axis can shard across the
            # two TensorCores on v7x.
            TB = min(TB, _ceil_div(B, 2))
        B_pad = _round_up(B, TB)
        xp = x if B_pad == B else jnp.pad(x, ((0, B_pad - B), (0, 0), (0, 0)))

        block_bytes = TB * per_batch_bytes
        cost = pl.CostEstimate(
            flops=4 * B * C * Cse + 3 * B * C * L,
            transcendentals=B * C,
            bytes_accessed=2 * B * C * L * itemsize + weight_bytes,
        )
        y = pl.pallas_call(
            _se_fused_kernel,
            out_shape=jax.ShapeDtypeStruct((B_pad, C, L), x.dtype),
            grid_spec=pltpu.PrefetchScalarGridSpec(
                num_scalar_prefetch=0,
                grid=(B_pad // TB,),
                in_specs=[
                    pl.BlockSpec((TB, C, L), lambda b: (b, 0, 0)),    # x
                    pl.BlockSpec((C, Cse), lambda b: (0, 0)),         # W1^T
                    pl.BlockSpec((1, Cse), lambda b: (0, 0)),         # b1
                    pl.BlockSpec((Cse, C), lambda b: (0, 0)),         # W2^T
                    pl.BlockSpec((1, C), lambda b: (0, 0)),           # b2
                ],
                out_specs=pl.BlockSpec((TB, C, L), lambda b: (b, 0, 0)),
            ),
            compiler_params=pltpu.CompilerParams(
                dimension_semantics=("parallel",),
                vmem_limit_bytes=_vmem_limit(block_bytes, weight_bytes, vmem_cap, 7),
            ),
            cost_estimate=cost,
        )(xp, w1t, b1r, w2t, b2r)
        return y if B_pad == B else y[:B]

    # --------------------------------------------------------------- two-pass
    # L tile: 128-aligned, sized so a (C, TL) row-slab hits the block target.
    tl_cap = max(_LANE, (target_block // max(1, C * itemsize)) // _LANE * _LANE)
    if max_l_tile is not None:
        tl_cap = max(_LANE, min(tl_cap, (int(max_l_tile) // _LANE) * _LANE))
    L_up = _round_up(L, _LANE)
    TL = min(L_up, tl_cap)
    L_pad = _round_up(L, TL)

    tb_cap = max(1, target_block // max(1, C * TL * itemsize))
    TB = max(1, min(B, tb_cap))
    if B >= 2:
        TB = min(TB, _ceil_div(B, 2))
    B_pad = _round_up(B, TB)

    need_pad = (B_pad != B) or (L_pad != L)
    xp = x if not need_pad else jnp.pad(x, ((0, B_pad - B), (0, 0), (0, L_pad - L)))

    n_b, n_l = B_pad // TB, L_pad // TL
    block_bytes = TB * C * TL * itemsize
    vmem_limit = _vmem_limit(block_bytes, weight_bytes, vmem_cap, 6)

    # Pass 1: gates g = sigmoid(W2 @ relu(W1 @ mean_L(x) + b1) + b2), lane-dense
    # (B_pad, 1, C) f32.  Zero L-padding adds nothing to the sum; the mean uses
    # the true 1/L.
    gates = pl.pallas_call(
        functools.partial(_se_gates_kernel, inv_len=1.0 / L),
        out_shape=jax.ShapeDtypeStruct((B_pad, 1, C), jnp.float32),
        grid_spec=pltpu.PrefetchScalarGridSpec(
            num_scalar_prefetch=0,
            grid=(n_b, n_l),
            in_specs=[
                pl.BlockSpec((TB, C, TL), lambda b, l: (b, 0, l)),
                pl.BlockSpec((C, Cse), lambda b, l: (0, 0)),
                pl.BlockSpec((1, Cse), lambda b, l: (0, 0)),
                pl.BlockSpec((Cse, C), lambda b, l: (0, 0)),
                pl.BlockSpec((1, C), lambda b, l: (0, 0)),
            ],
            out_specs=pl.BlockSpec((TB, 1, C), lambda b, l: (b, 0, 0)),
            scratch_shapes=[pltpu.VMEM((TB, C), jnp.float32)],
        ),
        compiler_params=pltpu.CompilerParams(
            dimension_semantics=("parallel", "arbitrary"),
            vmem_limit_bytes=vmem_limit,
        ),
        cost_estimate=pl.CostEstimate(
            flops=B * C * L + 4 * B * C * Cse,
            transcendentals=B * C,
            bytes_accessed=B * C * L * itemsize + 4 * B * C + weight_bytes,
        ),
    )(xp, w1t, b1r, w2t, b2r)

    # Pass 2: lane-dense elementwise scaling, both grid axes parallel.
    y = pl.pallas_call(
        _se_scale_kernel,
        out_shape=jax.ShapeDtypeStruct((B_pad, C, L_pad), x.dtype),
        grid_spec=pltpu.PrefetchScalarGridSpec(
            num_scalar_prefetch=0,
            grid=(n_b, n_l),
            in_specs=[
                pl.BlockSpec((TB, 1, C), lambda b, l: (b, 0, 0)),
                pl.BlockSpec((TB, C, TL), lambda b, l: (b, 0, l)),
            ],
            out_specs=pl.BlockSpec((TB, C, TL), lambda b, l: (b, 0, l)),
        ),
        compiler_params=pltpu.CompilerParams(
            dimension_semantics=("parallel", "parallel"),
            vmem_limit_bytes=vmem_limit,
        ),
        cost_estimate=pl.CostEstimate(
            flops=B * C * L,
            transcendentals=0,
            bytes_accessed=2 * B * C * L * itemsize + 4 * B * C,
        ),
    )(gates, xp)
    if need_pad:
        y = y[:B, :, :L]
    return y


# ---------------------------------------------------------------------------
# Pure-JAX reference matching the PyTorch module semantics.
# ---------------------------------------------------------------------------
def se_block_ref(x, w1, b1, w2, b2):
    s = jnp.mean(x, axis=2, keepdims=True)                        # (B, C, 1)
    h = jnp.einsum("oc,bcl->bol", w1, s) + b1[None, :, None]      # (B, Cse, 1)
    h = jnp.maximum(h, 0.0)
    z = jnp.einsum("oc,bcl->bol", w2, h) + b2[None, :, None]      # (B, C, 1)
    g = 1.0 / (1.0 + jnp.exp(-z))
    return g * x


if __name__ == "__main__":
    # Small shapes consistent with the module: batch=2, channels=16, SE=8, L=32.
    B, C, Cse, L = 2, 16, 8, 32

    key = jax.random.PRNGKey(0)
    k_x, k_w1, k_b1, k_w2, k_b2, k_x2 = jax.random.split(key, 6)

    x = jax.random.normal(k_x, (B, C, L), dtype=jnp.float32)

    # PyTorch Conv1d default init: U(-1/sqrt(fan_in), 1/sqrt(fan_in)), kernel=1.
    bound1 = 1.0 / (C ** 0.5)
    w1 = jax.random.uniform(k_w1, (Cse, C), jnp.float32, -bound1, bound1)
    b1 = jax.random.uniform(k_b1, (Cse,), jnp.float32, -bound1, bound1)
    bound2 = 1.0 / (Cse ** 0.5)
    w2 = jax.random.uniform(k_w2, (C, Cse), jnp.float32, -bound2, bound2)
    b2 = jax.random.uniform(k_b2, (C,), jnp.float32, -bound2, bound2)

    # Tolerances account for the EUP approximate reciprocal in the sigmoid.
    TOL_F32 = 2e-2
    TOL_BF16 = 5e-2

    # 1) Fused path, f32 I/O.
    y = jax.block_until_ready(se_block(x, w1, b1, w2, b2))
    y_ref = jax.block_until_ready(se_block_ref(x, w1, b1, w2, b2))
    assert y.shape == (B, C, L) and y.dtype == x.dtype
    assert jnp.allclose(y, y_ref, atol=TOL_F32, rtol=0), "fused f32 mismatch"

    # 2) Fused path, bf16 I/O (halves HBM traffic; gate math stays f32 inside).
    x_bf = x.astype(jnp.bfloat16)
    y_bf = jax.block_until_ready(se_block(x_bf, w1, b1, w2, b2))
    y_bf_ref = se_block_ref(x_bf.astype(jnp.float32), w1, b1, w2, b2)
    assert y_bf.dtype == jnp.bfloat16
    assert jnp.allclose(y_bf.astype(jnp.float32), y_bf_ref, atol=TOL_BF16, rtol=0), \
        "fused bf16 mismatch"

    # 3) Two-pass (L-tiled) fallback, forced; L=200 is NOT a multiple of 128 so
    #    this also exercises the zero-pad + true-1/L mean correction and the
    #    multi-tile reduction (TL=128 -> 2 L-tiles after padding to 256).
    L2 = 200
    x2 = jax.random.normal(k_x2, (B, C, L2), dtype=jnp.float32)
    y2 = jax.block_until_ready(
        se_block(x2, w1, b1, w2, b2, force_two_pass=True, max_l_tile=128))
    y2_ref = jax.block_until_ready(se_block_ref(x2, w1, b1, w2, b2))
    assert y2.shape == (B, C, L2) and y2.dtype == x2.dtype
    assert jnp.allclose(y2, y2_ref, atol=TOL_F32, rtol=0), "two-pass mismatch"

    print("KERNEL_OK")
</pallas_src>

<mosaic_0001>
module attributes {stable_mosaic.version = 11 : i64} {
  func.func @_se_fused_kernel(%arg0: i32, %arg1: memref<1x16x32xf32, #tpu.memory_space<vmem>>, %arg2: memref<16x8xf32, #tpu.memory_space<vmem>>, %arg3: memref<1x8xf32, #tpu.memory_space<vmem>>, %arg4: memref<8x16xf32, #tpu.memory_space<vmem>>, %arg5: memref<1x16xf32, #tpu.memory_space<vmem>>, %arg6: memref<1x16x32xf32, #tpu.memory_space<vmem>>) attributes {dimension_semantics = [#tpu.dimension_semantics<parallel>], iteration_bounds = array<i64: 2>, scalar_prefetch = 0 : i64, scratch_operands = 0 : i64, tpu.core_type = #tpu.core_type<tc>, window_params = [{transform_indices = @transform_0, window_bounds = array<i64: 1, 16, 32>}, {pipeline_mode = #tpu.pipeline_mode<synchronous>, transform_indices = @transform_1, window_bounds = array<i64: 16, 8>}, {pipeline_mode = #tpu.pipeline_mode<synchronous>, transform_indices = @transform_2, window_bounds = array<i64: 1, 8>}, {pipeline_mode = #tpu.pipeline_mode<synchronous>, transform_indices = @transform_3, window_bounds = array<i64: 8, 16>}, {pipeline_mode = #tpu.pipeline_mode<synchronous>, transform_indices = @transform_4, window_bounds = array<i64: 1, 16>}, {transform_indices = @transform_5, window_bounds = array<i64: 1, 16, 32>}]} {
    %c0 = arith.constant 0 : index
    %c0_0 = arith.constant 0 : index
    %c0_1 = arith.constant 0 : index
    %0 = vector.load %arg1[%c0, %c0_0, %c0_1] : memref<1x16x32xf32, #tpu.memory_space<vmem>>, vector<1x16x32xf32>
    %cst = arith.constant dense<0.000000e+00> : vector<1x16xf32>
    %1 = vector.multi_reduction <add>, %0, %cst [2] : vector<1x16x32xf32> to vector<1x16xf32>
    %cst_2 = arith.constant 3.200000e+01 : f32
    %2 = vector.broadcast %cst_2 : f32 to vector<1x16xf32>
    %3 = arith.divf %1, %2 : vector<1x16xf32>
    %c0_3 = arith.constant 0 : index
    %c0_4 = arith.constant 0 : index
    %4 = vector.load %arg2[%c0_3, %c0_4] : memref<16x8xf32, #tpu.memory_space<vmem>>, vector<16x8xf32>
    %cst_5 = arith.constant dense<0.000000e+00> : vector<1x8xf32>
    %5 = tpu.matmul %3, %4, %cst_5 {dimension_numbers = #tpu.dot_dimension_numbers<[1], [0], [0], [1], [0, 0, 1, 1], [], []>} : vector<1x16xf32>, vector<16x8xf32>, vector<1x8xf32> -> vector<1x8xf32>
    %c0_6 = arith.constant 0 : index
    %c0_7 = arith.constant 0 : index
    %6 = vector.load %arg3[%c0_6, %c0_7] : memref<1x8xf32, #tpu.memory_space<vmem>>, vector<1x8xf32>
    %7 = arith.addf %5, %6 : vector<1x8xf32>
    %cst_8 = arith.constant 0.000000e+00 : f32
    %8 = vector.broadcast %cst_8 : f32 to vector<1x8xf32>
    %9 = arith.maximumf %7, %8 : vector<1x8xf32>
    %c0_9 = arith.constant 0 : index
    %c0_10 = arith.constant 0 : index
    %10 = vector.load %arg4[%c0_9, %c0_10] : memref<8x16xf32, #tpu.memory_space<vmem>>, vector<8x16xf32>
    %cst_11 = arith.constant dense<0.000000e+00> : vector<1x16xf32>
    %11 = tpu.matmul %9, %10, %cst_11 {dimension_numbers = #tpu.dot_dimension_numbers<[1], [0], [0], [1], [0, 0, 1, 1], [], []>} : vector<1x8xf32>, vector<8x16xf32>, vector<1x16xf32> -> vector<1x16xf32>
    %c0_12 = arith.constant 0 : index
    %c0_13 = arith.constant 0 : index
    %12 = vector.load %arg5[%c0_12, %c0_13] : memref<1x16xf32, #tpu.memory_space<vmem>>, vector<1x16xf32>
    %13 = arith.addf %11, %12 : vector<1x16xf32>
    %cst_14 = arith.constant 0.000000e+00 : f32
    %14 = vector.broadcast %cst_14 : f32 to vector<1x16xf32>
    %15 = arith.subf %14, %13 : vector<1x16xf32>
    %16 = math.exp %15 : vector<1x16xf32>
    %cst_15 = arith.constant 1.000000e+00 : f32
    %17 = vector.broadcast %cst_15 : f32 to vector<1x16xf32>
    %18 = arith.addf %17, %16 : vector<1x16xf32>
    %19 = tpu.reciprocal %18 {approx = true} : vector<1x16xf32> -> vector<1x16xf32>
    %20 = vector.shape_cast %19 : vector<1x16xf32> to vector<1x16x1xf32>
    %c0_16 = arith.constant 0 : index
    %c0_17 = arith.constant 0 : index
    %c0_18 = arith.constant 0 : index
    %21 = vector.load %arg1[%c0_16, %c0_17, %c0_18] : memref<1x16x32xf32, #tpu.memory_space<vmem>>, vector<1x16x32xf32>
    %22 = vector.broadcast %20 : vector<1x16x1xf32> to vector<1x16x32xf32>
    %23 = arith.mulf %22, %21 : vector<1x16x32xf32>
    %c0_19 = arith.constant 0 : index
    %c0_20 = arith.constant 0 : index
    %c0_21 = arith.constant 0 : index
    %24 = vector.load %arg6[%c0_19, %c0_20, %c0_21] : memref<1x16x32xf32, #tpu.memory_space<vmem>>, vector<1x16x32xf32>
    tpu.vector_store %arg6[%c0_19, %c0_20, %c0_21], %23 {strides = array<i32>} : memref<1x16x32xf32, #tpu.memory_space<vmem>>, vector<1x16x32xf32>,
    return
  }
  func.func @transform_0(%arg0: i32) -> (i32, i32, i32) {
    %c0_i32 = arith.constant 0 : i32
    %c0_i32_0 = arith.constant 0 : i32
    %c0_i32_1 = arith.constant 0 : i32
    return %arg0, %c0_i32, %c0_i32_0 : i32, i32, i32
  }
  func.func @transform_1(%arg0: i32) -> (i32, i32) {
    %c0_i32 = arith.constant 0 : i32
    %c0_i32_0 = arith.constant 0 : i32
    %c0_i32_1 = arith.constant 0 : i32
    return %c0_i32, %c0_i32_0 : i32, i32
  }
  func.func @transform_2(%arg0: i32) -> (i32, i32) {
    %c0_i32 = arith.constant 0 : i32
    %c0_i32_0 = arith.constant 0 : i32
    %c0_i32_1 = arith.constant 0 : i32
    return %c0_i32, %c0_i32_0 : i32, i32
  }
  func.func @transform_3(%arg0: i32) -> (i32, i32) {
    %c0_i32 = arith.constant 0 : i32
    %c0_i32_0 = arith.constant 0 : i32
    %c0_i32_1 = arith.constant 0 : i32
    return %c0_i32, %c0_i32_0 : i32, i32
  }
  func.func @transform_4(%arg0: i32) -> (i32, i32) {
    %c0_i32 = arith.constant 0 : i32
    %c0_i32_0 = arith.constant 0 : i32
    %c0_i32_1 = arith.constant 0 : i32
    return %c0_i32, %c0_i32_0 : i32, i32
  }
  func.func @transform_5(%arg0: i32) -> (i32, i32, i32) {
    %c0_i32 = arith.constant 0 : i32
    %c0_i32_0 = arith.constant 0 : i32
    %c0_i32_1 = arith.constant 0 : i32
    return %arg0, %c0_i32, %c0_i32_0 : i32, i32, i32
  }
}

</mosaic_0001>

<bundles_post_ra>
// kernel: tpu_custom_call.1
= control target key start
LH: loop header
LB: loop body
LE: loop exit
PB: predicated region body
PF: predicated region fallthrough
CT: control target
= control target key end

     0   :  { %10 = vsyncpa [#allocation3], 0  ;;  %s801_s0 = inlined_call_operand.hbm [shape: f32[2,16,32], index: 0, kind: input, shape index: {}]   ;;  %s802_s1 = inlined_call_operand.vmem [shape: f32[16,8], index: 1, kind: input, shape index: {}]   ;;  %s803_s2 = inlined_call_operand.vmem [shape: f32[1,8], index: 2, kind: input, shape index: {}]   ;;  %s804_s3 = inlined_call_operand.vmem [shape: f32[8,16], index: 3, kind: input, shape index: {}]   ;;  %s805_s4 = inlined_call_operand.vmem [shape: f32[1,16], index: 4, kind: input, shape index: {}]   ;;  %s806_s5 = inlined_call_operand.hbm [shape: f32[2,16,32], index: 5, kind: output, shape index: {}]  }
   0x1   :  { %12 = vsyncpa [#allocation3 + $0x1], 0 }
   0x2   :  { %13 = vsyncpa [#allocation4], 0 }
   0x3   :  { %15 = vsyncpa [#allocation4 + $0x1], 0  ;;  %s647_s18 = smov 0   ;;  %s649_s19 = smov 0  }
   0x4   :  { %s651_s20 = smov 0   ;;  %s653_s21 = smov 0  }
   0x5 LB: > { %s668_s22 = sadd.s32 4294967295, %s610_s21   ;;  %s436_s23 = sadd.s32 4294967294, %s610_s21   ;;  %s610_s21 = sphi %s653_s21, %s816_s21   ;;  %s606_s20 = sphi %s651_s20, %s815_s20   ;;  %s602_s19 = sphi %s649_s19, %s814_s19   ;;  %s598_s18 = sphi %s647_s18, %s813_s18  }
   0x6   : > { %s672_s24 = sadd.s32 1, %s610_s21   ;;  %s28_s25 = sadd.s32 1, %s606_s20 }
   0x7   : > { %s25_s26 = ssub.s32 %s610_s21, %s672_s24  ;;  %p35_p0 = scmp.ne.s32.totalorder %s606_s20, %s602_s19 }
   0x8   : > { %p26_p1 = scmp.eq.s32.totalorder %s25_s26, 0  ;;  %p36_p2 = scmp.eq.s32.totalorder %s610_s21, 0 }
   0x9   : > { %p41_p3 = scmp.ne.s32.totalorder %s602_s19, %s598_s18  ;;  %p42_p4 = scmp.eq.s32.totalorder %s668_s22, 0 }
   0xa   : > { %s684_s27 = scalar_select %p26_p1, %s606_s20, %s28_s25  }
   0xb   : > { %p686_p5 = por %p36_p2, %p35_p0  ;;  %p690_p6 = por %p42_p4, %p41_p3 }
   0xc   : > { %p149_p7 = scmp.eq.s32.totalorder %s668_s22, 1  ;;  %p155_p8 = scmp.eq.s32.totalorder %s436_s23, 1 }
   0xd   : > { %p466_p10 = scmp.lt.s32.totalorder %s610_s21, 2  ;;  %s187_s7 = sand.u32 1, %s606_s20  }
   0xe   : > { %p697_p11 = por %p149_p7, %p35_p0  ;;  %p701_p12 = por %p155_p8, %p41_p3 }
   0xf   : > { %s452_s8 = sshll.u32 %s610_s21, 4  ;;  %s439_s9 = sshll.u32 %s187_s7, 4 }
  0x10   : > { %s196_s12 = scalar_lea.hbm %s801_s0, %s452_s8  ;;  %s191_s14 = scalar_lea.vmem [#allocation2], %s439_s9 }
  0x11   : > { %s197_s13 = sshll.u32 %s196_s12, 4  ;;  %s199_s15 = sshll.u32 %s191_s14, 4  ;;  %s198_s13 = int_to_ptr.hbm [resolvable:$true] %s197_s13  ;;  %s200_s15 = int_to_ptr.vmem [resolvable:$true] %s199_s15 }
  0x12   : > { %p712_p13 = pnand %p466_p10, %p686_p5  ;;  %p442_p0 = scmp.ge.s32.totalorder %s610_s21, 1 }
  0x13   : > { %p207_p1 = scmp.lt.s32.totalorder %s610_s21, 3  ;;  %s188_s17 = scalar_lea.sflag [#allocation3], %s187_s7 }
  0x14   : > { %s514_s23 = sshra.s32 %s198_s13, 4  ;;  %p518_p3 = pneg %p712_p13  ;;  %s515_s23 = int_to_ptr.hbm [resolvable:$true] %s514_s23 }
  0x15   : > { %s516_s25 = scalar_lea.hbm %s515_s23, 16  ;;  %s521_s28 = scalar_lea.hbm %s801_s0, 32 }
  0x16   : > { %p517_p2 = scmp.ne.s32.totalorder %s515_s23, %s516_s25  ;;  %p522_p5 = scmp.lt.s32.totalorder %s515_s23, %s801_s0 }
  0x17   : > { %p523_p8 = scmp.lt.s32.totalorder %s521_s28, %s516_s25 }
  0x18   : > { %p519_p4 = pnand %p518_p3, %p517_p2 }
  0x19   : > { %p524_p10 = por %p523_p8, %p522_p5 }
  0x1a   : > { %p520_p7 = pneg %p519_p4 }
  0x1c   : > { %p525_p9 = pnand %p524_p10, %p520_p7 }
  0x1e   : > { %528 = shalt.err (!%p525_p9)
}
  0x1f   : > { %s612_s7 = smov 128   ;;  %s613_s11 = smov 8  }
  0x20   : > { %461 = dma.hbm_to_vmem [thread:$0]  (!%p712_p13), %s198_s13, 256, %s200_s15, %s188_s17, %s612_s7, %s612_s7, %s613_s11  }
  0x21   : > { %p208_p2 = pnand %p442_p0, %p207_p1 }
  0x22   : > { %s733_s12 = sand.u32 (!%p208_p2), 1, %s602_s19  }
  0x23   : > { %211 = sbr.rel (%p208_p2) target bundleno = 589 (0x24d), region = 40  ;;  %s443_s14 = sshll.u32 (!%p208_p2), %s733_s12, 4 }
  0x24   : > { %s214_s23 = scalar_lea.sflag (!%p208_p2), [#allocation3], %s733_s12  ;;  %s217_s25 = scalar_lea.vmem (!%p208_p2), [#allocation2], %s443_s14 }
  0x28   : > { %589 = dma.done.wait (%p690_p6), %s214_s23, 256  }
  0x29   : > { %591 = vsyncadd (%p690_p6), %s214_s23, 4294967040  ;;  %vm247_vm0 = vcmask 261120   ;;  %v245_v0 = vld [vmem:[%s217_s25] sm:$0xff]  ;;  %v744_v2 = vld [vmem:[%s217_s25 + $0x8] sm:$0xff]  ;;  %v614_v5 = vmov 32.0   ;;  %v268_v13 = vlaneseq  ;;  %vm273_vm2 = vcmask 130112  }
  0x2a   : > { %v248_v1 = vsel %vm247_vm0, %v245_v0, 0.0  ;;  %v251_v3 = vsel %vm247_vm0, %v744_v2, 0.0  ;;  %v264_v4 = vld [vmem:[%s802_s1 + $0x8] sm:$0xff]  ;;  %508 = vrcp.f32 %v614_v5  ;;  %v263_v6 = vld [vmem:[%s802_s1] sm:$0xff]  ;;  %vm275_vm3 = vcmask 130048   ;;  %s244_s7 = scalar_lea.vmem [#allocation5], %s443_s14 }
  0x2b   : > { %249 = vadd.xlane.f32.xlu0 %v248_v1  ;;  %292 = vmatpush.msra.mxu0 %v264_v4  ;;  %v269_v15 = vand.u32 127, %v268_v13  ;;  %v299_v23 = vld [vmem:[%s804_s3] sm:$0xff]  ;;  %vm301_vm4 = vcmask 64512   ;;  %v332_v28 = vshrl.u32 %v268_v13, 7  ;;  %s453_s11 = sshll.u32 %s668_s22, 4  ;;  %s360_s15 = sshll.u32 %s244_s7, 4  ;;  %s361_s15 = int_to_ptr.vmem [resolvable:$true] %s360_s15 }
  0x2c   : > { %320 = vmatpush.msra.mxu1 %v299_v23  ;;  %v265_v24 = vld [vmem:[%s803_s2] sm:$0x1]  ;;  %s359_s13 = scalar_lea.hbm %s806_s5, %s453_s11  ;;  %s348_s16 = scalar_lea.sflag [#allocation4], %s733_s12 }
  0x2d   : > { %293 = vmatpush.msra.mxu0 %v263_v6  ;;  %v271_v17 = vadd.s32 4294967288, %v269_v15  ;;  %505 = vset.pattern.permute.xlu1 %v332_v28  ;;  %v339_v29 = vadd.s32 8, %v332_v28  ;;  %v300_v30 = vld [vmem:[%s805_s4] sm:$0x1]  ;;  %s362_s29 = sshll.u32 %s359_s13, 4  ;;  %s564_s8 = scalar_lea.hbm %s806_s5, 32  ;;  %s363_s29 = int_to_ptr.hbm [resolvable:$true] %s362_s29 }
  0x2e   : > { %s558_s17 = sshra.s32 %s363_s29, 4  ;;  %s559_s17 = int_to_ptr.hbm [resolvable:$true] %s558_s17 }
  0x2f   : > { %507 = vset.pattern.permute.xlu0 %v339_v29  ;;  %s560_s14 = scalar_lea.hbm %s559_s17, 16  ;;  %p565_p0 = scmp.lt.s32.totalorder %s559_s17, %s806_s5 }
  0x30   : > { %v509_v7 = vpop.eup %508  ;;  %p561_p6 = scmp.ne.s32.totalorder %s559_s17, %s560_s14  ;;  %p566_p1 = scmp.lt.s32.totalorder %s564_s8, %s560_s14 }
  0x31   : > { %v255_v8 = vmul.f32 32.0, %v509_v7  ;;  %vm259_vm1 = vweird.f32 %v509_v7 }
  0x32   : > { %p562_p9 = pnand %p561_p6, %p697_p11  ;;  %p567_p3 = por %p566_p1, %p565_p0 }
  0x33   : > { %252 = vadd.xlane.f32.xlu0 %v251_v3  ;;  %v256_v9 = vsub.f32 1.0, %v255_v8 }
  0x34   : > { %p563_p13 = pneg %p562_p9 }
  0x35   : > { %v257_v10 = vmul.f32 %v509_v7, %v256_v9 }
  0x36   : > { %p568_p4 = pnand %p567_p3, %p563_p13 }
  0x37   : > { %v258_v11 = vadd.f32 %v509_v7, %v257_v10 }
  0x39   : > { %v260_v14 = vsel %vm259_vm1, %v509_v7, %v258_v11 }
  0x9e   : > { %v250_v12 = vpop.xlane.xlu0 %249 }
  0x9f   : > { %v261_v16 = vmul.f32 %v260_v14, %v250_v12 }
  0xa1   : > { %v270_v20 = vperm.slane %v261_v16, %v269_v15 }
  0xa6   : > { %v253_v18 = vpop.xlane.xlu0 %252 }
  0xa7   : > { %v262_v19 = vmul.f32 %v260_v14, %v253_v18 }
  0xa9   : > { %v272_v21 = vperm.slane %v262_v19, %v271_v17 }
  0xab   : > { %v274_v22 = vsel %vm273_vm2, %v272_v21, %v270_v20 }
  0xac   : > { %445 = vmatmul.msk.f32.vlgmr.msra.gmra.mxu0 %vm275_vm3, %v274_v22 }
 0x129   : > { %v295_v25 = vpop.f32.mrf.mxu0 }
 0x12a   : > { %v296_v26 = vadd.f32 %v295_v25, %v265_v24 }
 0x12c   : > { %v298_v27 = vmax.f32 %v296_v26, 0.0 }
 0x12e   : > { %446 = vmatmul.msk.f32.vlgmr.msra.gmra.mxu1 %vm301_vm4, %v298_v27 }
 0x1ab   : > { %v322_v31 = vpop.f32.mrf.mxu1 }
 0x1ac   : > { %v323_v32 = vadd.f32 %v322_v31, %v300_v30 }
 0x1ae   : > { %v325_v33 = vsub.f32 0.0, %v323_v32 }
 0x1b0   : > { %v326_v34 = vmul.f32 1.442695, %v325_v33 }
 0x1b2   : > { %510 = vpow2.f32 %v326_v34 }
 0x1b8   : > { %v511_v35 = vpop.eup %510 }
 0x1b9   : > { %v328_v36 = vadd.f32 1.0, %v511_v35 }
 0x1bb   : > { %512 = vrcp.f32 %v328_v36 }
 0x1c1   : > { %v513_v37 = vpop.eup %512 }
 0x1c2   : > { %v330_v38 = vperm.slane %v513_v37, 0 }
 0x1c4   : > { %335 = vperm.xlu1 %505, %v330_v38  }
 0x1cc   : > { %506 = vset.pattern.permute.xlu1 %v339_v29 }
 0x1d4   : > { %341 = vperm.xlu1 %506, %v330_v38  }
 0x236   : > { %v336_v39 = vpop.permute.xlu1 %335 }
 0x237   : > { %v343_v40 = vmul.f32 %v336_v39, %v245_v0 }
 0x239   : > { %345 = vst.msk [vmem:[%s244_s7] sm:$0xff] %vm247_vm0, %v343_v40 }
 0x246   : > { %v342_v41 = vpop.permute.xlu1 %341 }
 0x247   : > { %v344_v42 = vmul.f32 %v342_v41, %v744_v2 }
 0x249   : > { %346 = vst.msk [vmem:[%s244_s7 + $0x8] sm:$0xff] %vm247_vm0, %v344_v42 }
 0x24a   : > { %571 = shalt.err (!%p568_p4)
}
 0x24b   : > { %s615_s12 = smov 128   ;;  %s616_s10 = smov 8  }
 0x24c   : > { %456 = dma.vmem_to_hbm [thread:$0]  (%p697_p11), %s361_s15, 256, %s363_s29, %s348_s16, %s615_s12, %s615_s12, %s616_s10  }
 0x24d PF: > { %s377_s7 = sand.u32 1, %s598_s18   ;;  %p812_p7 = scmp.ge.s32.totalorder %s610_s21, 2 }
 0x24e   : > { %s378_s11 = scalar_lea.sflag [#allocation4], %s377_s7 }
 0x24f   : > { %p463_p5 = pnand %p812_p7, %p701_p12 }
 0x251   : > { %p464_p8 = pneg %p463_p5 }
 0x253   : > { %593 = dma.done.wait (%p464_p8), %s378_s11, 256  }
 0x254   : > { %595 = vsyncadd (%p464_p8), %s378_s11, 4294967040  ;;  %p18_p10 = scmp.ge.s32.totalorder %s672_s24, 4   ;;  %s813_s18 = smov %s602_s19 }
 0x255   : > { %s814_s19 = smov %s606_s20  ;;  %s815_s20 = smov %s684_s27 }
 0x256   : > { %s816_s21 = smov %s672_s24  ;;  %20 = sbr.rel (!%p18_p10) target bundleno = 5 (0x5), region = 85 }
 0x25b   :  { %384 = vsyncpa [#allocation3], 1 }
 0x25c   :  { %386 = vsyncpa [#allocation3 + $0x1], 1 }
 0x25d   :  { %387 = vsyncpa [#allocation4], 1 }
 0x25e   :  { %389 = vsyncpa [#allocation4 + $0x1], 1 }

</bundles_post_ra>
